<compile_context>
chip_gen: v7x
topology: tpu7x:2x2x1
jax: 0.10.0
libtpu: 0.0.40
codegen_flags: <defaults>
</compile_context>

<pallas_src>
import jax
import jax.numpy as jnp
from jax.experimental import pallas as pl
from jax.experimental.pallas import tpu as pltpu

H1, H2, OUT = 100, 50, 2   # true feature widths of the PyTorch module
PAD = 128                  # lane-aligned padded feature width
EPS = 1e-5                 # BatchNorm1d default eps
SLOPE = 0.01               # F.leaky_relu default negative_slope


def _bn_leaky(h, gamma, beta):
    """Training-mode BatchNorm1d fused into one scale/shift, then leaky_relu."""
    mean = jnp.mean(h, axis=0, keepdims=True)                   # (1, PAD)
    centered = h - mean
    var = jnp.mean(centered * centered, axis=0, keepdims=True)  # biased var
    scale = gamma * jax.lax.rsqrt(var + EPS)                    # (1, PAD), EUP
    shift = beta - mean * scale
    h = h * scale + shift                                       # 2 VPU ops/elem
    return jnp.where(h > 0, h, SLOPE * h)


def gender_classifier_kernel(x_ref, vec_ref, w2_ref, w3_ref, o_ref):
    x = x_ref[...]          # (B, 2)
    vec = vec_ref[...]      # (8, PAD) packed per-feature vectors

    w1r0 = vec[0:1, :]      # linear1 weights for input feature 0
    w1r1 = vec[1:2, :]      # linear1 weights for input feature 1
    g1, be1 = vec[2:3, :], vec[3:4, :]
    g2, be2 = vec[4:5, :], vec[5:6, :]
    b3 = vec[6:7, :]

    # Layer 1: Linear(2,100) via two broadcasted VPU FMAs (no MXU, no b1).
    h = x[:, 0:1] * w1r0 + x[:, 1:2] * w1r1      # (B, PAD)
    h = _bn_leaky(h, g1, be1)

    # Layer 2: Linear(100,50), zero-padded to (PAD,PAD); b2 omitted (dead).
    h = jnp.dot(h, w2_ref[...], preferred_element_type=jnp.float32)
    h = _bn_leaky(h, g2, be2)

    # Layer 3: Linear(50,2), zero-padded to (PAD,PAD); lane-dense output.
    o_ref[...] = (
        jnp.dot(h, w3_ref[...], preferred_element_type=jnp.float32) + b3
    ).astype(o_ref.dtype)


def pack_params(params):
    """One-time host-side packing into 3 lane-aligned kernel arguments."""
    vec = jnp.zeros((8, PAD), jnp.float32)
    vec = vec.at[0, :H1].set(params["w1"][0])
    vec = vec.at[1, :H1].set(params["w1"][1])
    vec = vec.at[2, :H1].set(params["g1"])
    vec = vec.at[3, :H1].set(params["be1"])
    vec = vec.at[4, :H2].set(params["g2"])
    vec = vec.at[5, :H2].set(params["be2"])
    vec = vec.at[6, :OUT].set(params["b3"])
    w2p = jnp.zeros((PAD, PAD), jnp.float32).at[:H1, :H2].set(params["w2"])
    w3p = jnp.zeros((PAD, PAD), jnp.float32).at[:H2, :OUT].set(params["w3"])
    return vec, w2p, w3p


def gender_classifier_forward(x, packed):
    vec, w2p, w3p = packed
    B = x.shape[0]
    cost = pl.CostEstimate(
        flops=2 * B * (2 * H1 + H1 * H2 + H2 * OUT),
        transcendentals=H1 + H2,
        bytes_accessed=4 * (x.size + vec.size + w2p.size + w3p.size + B * PAD),
    )
    out = pl.pallas_call(
        gender_classifier_kernel,
        out_shape=jax.ShapeDtypeStruct((B, PAD), jnp.float32),
        in_specs=[pl.BlockSpec(memory_space=pltpu.MemorySpace.VMEM)] * 4,
        out_specs=pl.BlockSpec(memory_space=pltpu.MemorySpace.VMEM),
        cost_estimate=cost,
    )(x, vec, w2p, w3p)
    return out[:, :OUT]


def init_params(key):
    """PyTorch default Linear init U(-1/sqrt(fan_in), 1/sqrt(fan_in)); weights
    stored (in, out); BN affine at defaults gamma=1, beta=0.  b1/b2 are created
    only for the reference (they are algebraically dead under training-mode BN)."""
    keys = jax.random.split(key, 6)

    def lin_init(kw, kb, fan_in, fan_out):
        bound = 1.0 / jnp.sqrt(jnp.float32(fan_in))
        w = jax.random.uniform(kw, (fan_in, fan_out), jnp.float32, -bound, bound)
        b = jax.random.uniform(kb, (fan_out,), jnp.float32, -bound, bound)
        return w, b

    w1, b1 = lin_init(keys[0], keys[1], 2, H1)
    w2, b2 = lin_init(keys[2], keys[3], H1, H2)
    w3, b3 = lin_init(keys[4], keys[5], H2, OUT)
    return {
        "w1": w1, "b1": b1,
        "g1": jnp.ones((H1,), jnp.float32), "be1": jnp.zeros((H1,), jnp.float32),
        "w2": w2, "b2": b2,
        "g2": jnp.ones((H2,), jnp.float32), "be2": jnp.zeros((H2,), jnp.float32),
        "w3": w3, "b3": b3,
    }


def reference_forward(x, p):
    """Pure-JAX mirror of the PyTorch training-mode forward (includes b1/b2)."""
    h = x @ p["w1"] + p["b1"]
    m, v = h.mean(0, keepdims=True), h.var(0, keepdims=True)
    h = (h - m) / jnp.sqrt(v + EPS) * p["g1"] + p["be1"]
    h = jnp.where(h > 0, h, SLOPE * h)
    h = h @ p["w2"] + p["b2"]
    m, v = h.mean(0, keepdims=True), h.var(0, keepdims=True)
    h = (h - m) / jnp.sqrt(v + EPS) * p["g2"] + p["be2"]
    h = jnp.where(h > 0, h, SLOPE * h)
    return h @ p["w3"] + p["b3"]


if __name__ == "__main__":
    key = jax.random.PRNGKey(0)
    pkey, xkey = jax.random.split(key)
    params = init_params(pkey)
    packed = pack_params(params)

    B = 16  # small batch; training-mode BN needs B >= 2
    x = jax.random.normal(xkey, (B, 2), jnp.float32)

    out = gender_classifier_forward(x, packed)
    jax.block_until_ready(out)

    ref_out = reference_forward(x, params)
    assert out.shape == (B, OUT)
    assert jnp.allclose(out, ref_out, atol=1e-4, rtol=1e-4), float(
        jnp.max(jnp.abs(out - ref_out)))
    print("KERNEL_OK")
</pallas_src>

<mosaic_0001>
module attributes {stable_mosaic.version = 11 : i64} {
  func.func @gender_classifier_kernel(%arg0: memref<16x2xf32, #tpu.memory_space<vmem>>, %arg1: memref<8x128xf32, #tpu.memory_space<vmem>>, %arg2: memref<128x128xf32, #tpu.memory_space<vmem>>, %arg3: memref<128x128xf32, #tpu.memory_space<vmem>>, %arg4: memref<16x128xf32, #tpu.memory_space<vmem>>) attributes {dimension_semantics = [], scalar_prefetch = 0 : i64, scratch_operands = 0 : i64, tpu.core_type = #tpu.core_type<tc>} {
    %c0 = arith.constant 0 : index
    %c0_0 = arith.constant 0 : index
    %0 = vector.load %arg0[%c0, %c0_0] : memref<16x2xf32, #tpu.memory_space<vmem>>, vector<16x2xf32>
    %c0_1 = arith.constant 0 : index
    %c0_2 = arith.constant 0 : index
    %1 = vector.load %arg1[%c0_1, %c0_2] : memref<8x128xf32, #tpu.memory_space<vmem>>, vector<8x128xf32>
    %2 = vector.extract_strided_slice %1 {offsets = [0, 0], sizes = [1, 128], strides = [1, 1]} : vector<8x128xf32> to vector<1x128xf32>
    %3 = vector.extract_strided_slice %1 {offsets = [1, 0], sizes = [1, 128], strides = [1, 1]} : vector<8x128xf32> to vector<1x128xf32>
    %4 = vector.extract_strided_slice %1 {offsets = [2, 0], sizes = [1, 128], strides = [1, 1]} : vector<8x128xf32> to vector<1x128xf32>
    %5 = vector.extract_strided_slice %1 {offsets = [3, 0], sizes = [1, 128], strides = [1, 1]} : vector<8x128xf32> to vector<1x128xf32>
    %6 = vector.extract_strided_slice %1 {offsets = [4, 0], sizes = [1, 128], strides = [1, 1]} : vector<8x128xf32> to vector<1x128xf32>
    %7 = vector.extract_strided_slice %1 {offsets = [5, 0], sizes = [1, 128], strides = [1, 1]} : vector<8x128xf32> to vector<1x128xf32>
    %8 = vector.extract_strided_slice %1 {offsets = [6, 0], sizes = [1, 128], strides = [1, 1]} : vector<8x128xf32> to vector<1x128xf32>
    %9 = vector.extract_strided_slice %0 {offsets = [0, 0], sizes = [16, 1], strides = [1, 1]} : vector<16x2xf32> to vector<16x1xf32>
    %10 = vector.broadcast %9 : vector<16x1xf32> to vector<16x128xf32>
    %11 = vector.broadcast %2 : vector<1x128xf32> to vector<16x128xf32>
    %12 = arith.mulf %10, %11 : vector<16x128xf32>
    %13 = vector.extract_strided_slice %0 {offsets = [0, 1], sizes = [16, 1], strides = [1, 1]} : vector<16x2xf32> to vector<16x1xf32>
    %14 = vector.broadcast %13 : vector<16x1xf32> to vector<16x128xf32>
    %15 = vector.broadcast %3 : vector<1x128xf32> to vector<16x128xf32>
    %16 = arith.mulf %14, %15 : vector<16x128xf32>
    %17 = arith.addf %12, %16 : vector<16x128xf32>
    %cst = arith.constant dense<0.000000e+00> : vector<128xf32>
    %18 = vector.multi_reduction <add>, %17, %cst [0] : vector<16x128xf32> to vector<128xf32>
    %19 = vector.shape_cast %18 : vector<128xf32> to vector<1x128xf32>
    %cst_3 = arith.constant 1.600000e+01 : f32
    %20 = vector.broadcast %cst_3 : f32 to vector<1x128xf32>
    %21 = arith.divf %19, %20 : vector<1x128xf32>
    %22 = vector.broadcast %21 : vector<1x128xf32> to vector<16x128xf32>
    %23 = arith.subf %17, %22 : vector<16x128xf32>
    %24 = arith.mulf %23, %23 : vector<16x128xf32>
    %cst_4 = arith.constant dense<0.000000e+00> : vector<128xf32>
    %25 = vector.multi_reduction <add>, %24, %cst_4 [0] : vector<16x128xf32> to vector<128xf32>
    %26 = vector.shape_cast %25 : vector<128xf32> to vector<1x128xf32>
    %cst_5 = arith.constant 1.600000e+01 : f32
    %27 = vector.broadcast %cst_5 : f32 to vector<1x128xf32>
    %28 = arith.divf %26, %27 : vector<1x128xf32>
    %cst_6 = arith.constant 9.99999974E-6 : f32
    %29 = vector.broadcast %cst_6 : f32 to vector<1x128xf32>
    %30 = arith.addf %28, %29 : vector<1x128xf32>
    %31 = math.rsqrt %30 : vector<1x128xf32>
    %32 = arith.mulf %4, %31 : vector<1x128xf32>
    %33 = arith.mulf %21, %32 : vector<1x128xf32>
    %34 = arith.subf %5, %33 : vector<1x128xf32>
    %35 = vector.broadcast %32 : vector<1x128xf32> to vector<16x128xf32>
    %36 = arith.mulf %17, %35 : vector<16x128xf32>
    %37 = vector.broadcast %34 : vector<1x128xf32> to vector<16x128xf32>
    %38 = arith.addf %36, %37 : vector<16x128xf32>
    %cst_7 = arith.constant 0.000000e+00 : f32
    %39 = vector.broadcast %cst_7 : f32 to vector<16x128xf32>
    %40 = arith.cmpf ogt, %38, %39 : vector<16x128xf32>
    %cst_8 = arith.constant 0.00999999977 : f32
    %41 = vector.broadcast %cst_8 : f32 to vector<16x128xf32>
    %42 = arith.mulf %41, %38 : vector<16x128xf32>
    %43 = arith.select %40, %38, %42 : vector<16x128xi1>, vector<16x128xf32>
    %c0_9 = arith.constant 0 : index
    %c0_10 = arith.constant 0 : index
    %44 = vector.load %arg2[%c0_9, %c0_10] : memref<128x128xf32, #tpu.memory_space<vmem>>, vector<128x128xf32>
    %cst_11 = arith.constant dense<0.000000e+00> : vector<16x128xf32>
    %45 = tpu.matmul %43, %44, %cst_11 {dimension_numbers = #tpu.dot_dimension_numbers<[1], [0], [0], [1], [0, 0, 1, 1], [], []>} : vector<16x128xf32>, vector<128x128xf32>, vector<16x128xf32> -> vector<16x128xf32>
    %cst_12 = arith.constant dense<0.000000e+00> : vector<128xf32>
    %46 = vector.multi_reduction <add>, %45, %cst_12 [0] : vector<16x128xf32> to vector<128xf32>
    %47 = vector.shape_cast %46 : vector<128xf32> to vector<1x128xf32>
    %cst_13 = arith.constant 1.600000e+01 : f32
    %48 = vector.broadcast %cst_13 : f32 to vector<1x128xf32>
    %49 = arith.divf %47, %48 : vector<1x128xf32>
    %50 = vector.broadcast %49 : vector<1x128xf32> to vector<16x128xf32>
    %51 = arith.subf %45, %50 : vector<16x128xf32>
    %52 = arith.mulf %51, %51 : vector<16x128xf32>
    %cst_14 = arith.constant dense<0.000000e+00> : vector<128xf32>
    %53 = vector.multi_reduction <add>, %52, %cst_14 [0] : vector<16x128xf32> to vector<128xf32>
    %54 = vector.shape_cast %53 : vector<128xf32> to vector<1x128xf32>
    %cst_15 = arith.constant 1.600000e+01 : f32
    %55 = vector.broadcast %cst_15 : f32 to vector<1x128xf32>
    %56 = arith.divf %54, %55 : vector<1x128xf32>
    %cst_16 = arith.constant 9.99999974E-6 : f32
    %57 = vector.broadcast %cst_16 : f32 to vector<1x128xf32>
    %58 = arith.addf %56, %57 : vector<1x128xf32>
    %59 = math.rsqrt %58 : vector<1x128xf32>
    %60 = arith.mulf %6, %59 : vector<1x128xf32>
    %61 = arith.mulf %49, %60 : vector<1x128xf32>
    %62 = arith.subf %7, %61 : vector<1x128xf32>
    %63 = vector.broadcast %60 : vector<1x128xf32> to vector<16x128xf32>
    %64 = arith.mulf %45, %63 : vector<16x128xf32>
    %65 = vector.broadcast %62 : vector<1x128xf32> to vector<16x128xf32>
    %66 = arith.addf %64, %65 : vector<16x128xf32>
    %cst_17 = arith.constant 0.000000e+00 : f32
    %67 = vector.broadcast %cst_17 : f32 to vector<16x128xf32>
    %68 = arith.cmpf ogt, %66, %67 : vector<16x128xf32>
    %cst_18 = arith.constant 0.00999999977 : f32
    %69 = vector.broadcast %cst_18 : f32 to vector<16x128xf32>
    %70 = arith.mulf %69, %66 : vector<16x128xf32>
    %71 = arith.select %68, %66, %70 : vector<16x128xi1>, vector<16x128xf32>
    %c0_19 = arith.constant 0 : index
    %c0_20 = arith.constant 0 : index
    %72 = vector.load %arg3[%c0_19, %c0_20] : memref<128x128xf32, #tpu.memory_space<vmem>>, vector<128x128xf32>
    %cst_21 = arith.constant dense<0.000000e+00> : vector<16x128xf32>
    %73 = tpu.matmul %71, %72, %cst_21 {dimension_numbers = #tpu.dot_dimension_numbers<[1], [0], [0], [1], [0, 0, 1, 1], [], []>} : vector<16x128xf32>, vector<128x128xf32>, vector<16x128xf32> -> vector<16x128xf32>
    %74 = vector.broadcast %8 : vector<1x128xf32> to vector<16x128xf32>
    %75 = arith.addf %73, %74 : vector<16x128xf32>
    %c0_22 = arith.constant 0 : index
    %c0_23 = arith.constant 0 : index
    %76 = vector.load %arg4[%c0_22, %c0_23] : memref<16x128xf32, #tpu.memory_space<vmem>>, vector<16x128xf32>
    tpu.vector_store %arg4[%c0_22, %c0_23], %75 {strides = array<i32>} : memref<16x128xf32, #tpu.memory_space<vmem>>, vector<16x128xf32>,
    return
  }
}

</mosaic_0001>

<bundles_post_ra>
// kernel: tpu_custom_call.1
= control target key start
LH: loop header
LB: loop body
LE: loop exit
PB: predicated region body
PF: predicated region fallthrough
CT: control target
= control target key end

     0   :  { %9 = vsyncpa [#allocation3], 0  ;;  %s740_s0 = inlined_call_operand.vmem [shape: f32[16,2], index: 0, kind: input, shape index: {}]   ;;  %s741_s1 = inlined_call_operand.vmem [shape: f32[8,128], index: 1, kind: input, shape index: {}]   ;;  %s742_s2 = inlined_call_operand.hbm [shape: f32[128,128], index: 2, kind: input, shape index: {}]   ;;  %s743_s3 = inlined_call_operand.hbm [shape: f32[128,128], index: 3, kind: input, shape index: {}]   ;;  %s744_s4 = inlined_call_operand.hbm [shape: f32[16,128], index: 4, kind: output, shape index: {}]  }
   0x1   :  { %10 = vsyncpa [#allocation6], 0 }
   0x2   :  { %11 = vsyncpa [#allocation4], 0  ;;  %s636_s15 = smov [#allocation2]   ;;  %s564_s19 = scalar_lea.hbm %s742_s2, 2048 }
   0x3   :  { %s21_s16 = sshll.u32 %s636_s15, 4  ;;  %p565_p0 = scmp.ne.s32.totalorder %s742_s2, %s564_s19  ;;  %s22_s16 = int_to_ptr.vmem [resolvable:$true] %s21_s16 }
   0x4   :  { %p568_p1 = scmp.lt.u32.totalorder %s564_s19, %s742_s2 }
   0x6   :  { %p570_p2 = pnand %p568_p1, %p565_p0 }
   0x8   :  { %573 = shalt.err (!%p570_p2)
}
   0x9   :  { %s574_s24 = scalar_lea.vmem %s22_s16, 2048  ;;  %p579_p4 = scmp.lt.s32.totalorder %s22_s16, %s22_s16 }
   0xa   :  { %p575_p3 = scmp.ne.s32.totalorder %s22_s16, %s574_s24  ;;  %p580_p5 = scmp.lt.s32.totalorder %s574_s24, %s574_s24 }
   0xc   :  { %p581_p6 = por %p580_p5, %p579_p4 }
   0xe   :  { %p582_p7 = pnand %p581_p6, %p575_p3 }
  0x10   :  { %585 = shalt.err (!%p582_p7)
}
  0x11   :  { %s637_s25 = smov 128   ;;  %s638_s26 = smov 8  }
  0x12   :  { %27 = dma.hbm_to_vmem [thread:$0]  %s742_s2, 2048, %s22_s16, [#allocation3], %s637_s25, %s637_s25, %s638_s26  }
  0x13   :  { %s639_s29 = smov [#allocation5]   ;;  %s586_s7 = scalar_lea.hbm %s743_s3, 2048 }
  0x14   :  { %s33_s30 = sshll.u32 %s639_s29, 4  ;;  %p587_p8 = scmp.ne.s32.totalorder %s743_s3, %s586_s7  ;;  %s34_s30 = int_to_ptr.vmem [resolvable:$true] %s33_s30 }
  0x15   :  { %p590_p9 = scmp.lt.u32.totalorder %s586_s7, %s743_s3 }
  0x17   :  { %p592_p10 = pnand %p590_p9, %p587_p8 }
  0x19   :  { %595 = shalt.err (!%p592_p10)
}
  0x1a   :  { %s596_s12 = scalar_lea.vmem %s34_s30, 2048  ;;  %p601_p12 = scmp.lt.s32.totalorder %s34_s30, %s34_s30 }
  0x1b   :  { %p597_p11 = scmp.ne.s32.totalorder %s34_s30, %s596_s12  ;;  %p602_p13 = scmp.lt.s32.totalorder %s596_s12, %s596_s12 }
  0x1d   :  { %p603_p0 = por %p602_p13, %p601_p12 }
  0x1f   :  { %p604_p1 = pnand %p603_p0, %p597_p11 }
  0x21   :  { %607 = shalt.err (!%p604_p1)
}
  0x22   :  { %39 = dma.hbm_to_vmem [thread:$0]  %s743_s3, 2048, %s34_s30, [#allocation6], %s637_s25, %s637_s25, %s638_s26  }
  0x23   :  { %630 = dma.done.wait [#allocation3], 2048  }
  0x24   :  { %631 = vsyncadd [#allocation3], 4294965248 }
  0x25   :  { %632 = dma.done.wait [#allocation6], 2048  }
  0x26   :  { %633 = vsyncadd [#allocation6], 4294965248  ;;  %v640_v0 = vmov 1   ;;  %v641_v1 = vmov 0   ;;  %v46_v2 = vld [vmem:[%s740_s0] sm:$0xff]  ;;  %v47_v3 = vld [vmem:[%s740_s0 + $0x8] sm:$0xff]  ;;  %v59_v28 = vlaneseq }
  0x27   :  { %558 = vset.pattern.permute.xlu1 %v640_v0  ;;  %557 = vset.pattern.permute.xlu0 %v641_v1  ;;  %v128_v4 = vld [vmem:[#allocation2] sm:$0xff]  ;;  %v129_v5 = vld [vmem:[#allocation2 + $0x8] sm:$0xff]  ;;  %v130_v7 = vld [vmem:[#allocation2 + $0x10] sm:$0xff] }
  0x28   :  { %66 = vperm.xlu1 %558, %v46_v2   ;;  %51 = vperm.xlu0 %557, %v46_v2   ;;  %v486_v6 = vpack.c.bf16 %v129_v5, %v128_v4  ;;  %v131_v8 = vld [vmem:[#allocation2 + $0x18] sm:$0xff]  ;;  %v132_v10 = vld [vmem:[#allocation2 + $0x20] sm:$0xff]  ;;  %v133_v11 = vld [vmem:[#allocation2 + $0x28] sm:$0xff]  ;;  %v704_v29 = vshrl.u32 %v59_v28, 7 }
  0x29   :  { %v490_v9 = vpack.c.bf16 %v131_v8, %v130_v7  ;;  %v494_v12 = vpack.c.bf16 %v133_v11, %v132_v10  ;;  %v134_v13 = vld [vmem:[#allocation2 + $0x30] sm:$0xff]  ;;  %v135_v14 = vld [vmem:[#allocation2 + $0x38] sm:$0xff]  ;;  %v136_v16 = vld [vmem:[#allocation2 + $0x40] sm:$0xff] }
  0x2a   :  { %487 = vmatprep.subr.bf16.mxu0 %v486_v6  ;;  %v498_v15 = vpack.c.bf16 %v135_v14, %v134_v13  ;;  %v137_v17 = vld [vmem:[#allocation2 + $0x48] sm:$0xff]  ;;  %v138_v19 = vld [vmem:[#allocation2 + $0x50] sm:$0xff]  ;;  %v139_v20 = vld [vmem:[#allocation2 + $0x58] sm:$0xff]  ;;  %v75_v30 = vsub.s32 1, %v704_v29  ;;  %v61_v31 = vsub.s32 0, %v704_v29  ;;  %v118_v8 = vsub.s32 3, %v704_v29 }
  0x2b   :  { %489 = vmatpush3.bf16.msra.mxu0 %v486_v6  ;;  %v502_v18 = vpack.c.bf16 %v137_v17, %v136_v16  ;;  %v506_v21 = vpack.c.bf16 %v139_v20, %v138_v19  ;;  %v140_v22 = vld [vmem:[#allocation2 + $0x60] sm:$0xff]  ;;  %v141_v23 = vld [vmem:[#allocation2 + $0x68] sm:$0xff]  ;;  %v142_v24 = vld [vmem:[#allocation2 + $0x70] sm:$0xff] }
  0x2c   :  { %70 = vperm.xlu1 %558, %v47_v3   ;;  %56 = vperm.xlu0 %557, %v47_v3   ;;  %v510_v25 = vpack.c.bf16 %v141_v23, %v140_v22  ;;  %v143_v26 = vld [vmem:[#allocation2 + $0x78] sm:$0xff]  ;;  %v711_v32 = vld [vmem:[%s741_s1] sm:$0xff]  ;;  %v112_v3 = vsub.s32 2, %v704_v29  ;;  %v265_v19 = vld [vmem:[#allocation5] sm:$0xff]  ;;  %s642_s1 = smov [#allocation7]  }
  0x2d   :  { %491 = vmatprep.subr.bf16.mxu0 %v490_v9  ;;  %v514_v27 = vpack.c.bf16 %v143_v26, %v142_v24  ;;  %v76_v33 = vrot.slane %v711_v32, %v75_v30  ;;  %v62_v34 = vrot.slane %v711_v32, %v61_v31  ;;  %v266_v20 = vld [vmem:[#allocation5 + $0x8] sm:$0xff]  ;;  %v267_v22 = vld [vmem:[#allocation5 + $0x10] sm:$0xff]  ;;  %v268_v23 = vld [vmem:[#allocation5 + $0x18] sm:$0xff]  ;;  %s367_s18 = sshll.u32 %s642_s1, 4  ;;  %s368_s18 = int_to_ptr.vmem [resolvable:$true] %s367_s18 }
  0x2e   :  { %v522_v24 = vpack.c.bf16 %v268_v23, %v267_v22  ;;  %v270_v26 = vld [vmem:[#allocation5 + $0x28] sm:$0xff]  ;;  %v271_v28 = vld [vmem:[#allocation5 + $0x30] sm:$0xff]  ;;  %v272_v30 = vld [vmem:[#allocation5 + $0x38] sm:$0xff]  ;;  %s608_s19 = scalar_lea.vmem %s368_s18, 256  ;;  %p613_p3 = scmp.lt.s32.totalorder %s368_s18, %s368_s18 }
  0x2f   :  { %493 = vmatpush3.bf16.msra.mxu0 %v490_v9  ;;  %v530_v31 = vpack.c.bf16 %v272_v30, %v271_v28  ;;  %p609_p2 = scmp.ne.s32.totalorder %s368_s18, %s608_s19  ;;  %p614_p4 = scmp.lt.s32.totalorder %s608_s19, %s608_s19 }
  0x30   :  { %559 = vset.pattern.permute.xlu0 %v640_v0  ;;  %495 = vmatprep.subr.bf16.mxu0 %v494_v12 }
  0x31   :  { %p615_p5 = por %p614_p4, %p613_p3 }
  0x33   :  { %497 = vmatpush3.bf16.msra.mxu0 %v494_v12  ;;  %p616_p6 = pnand %p615_p5, %p609_p2 }
  0x34   :  { %499 = vmatprep.subr.bf16.mxu0 %v498_v15 }
  0x37   :  { %501 = vmatpush3.bf16.msra.mxu0 %v498_v15 }
  0x38   :  { %503 = vmatprep.subr.bf16.mxu0 %v502_v18 }
  0x3b   :  { %505 = vmatpush3.bf16.msra.mxu0 %v502_v18 }
  0x3c   :  { %507 = vmatprep.subr.bf16.mxu0 %v506_v21 }
  0x3f   :  { %509 = vmatpush3.bf16.msra.mxu0 %v506_v21  ;;  %v518_v21 = vpack.c.bf16 %v266_v20, %v265_v19 }
  0x40   :  { %511 = vmatprep.subr.bf16.mxu0 %v510_v25 }
  0x41   :  { %519 = vmatprep.subr.bf16.mxu1 %v518_v21 }
  0x42   :  { %521 = vmatpush3.bf16.msra.mxu1 %v518_v21  ;;  %v283_v21 = vsub.s32 6, %v704_v29 }
  0x43   :  { %513 = vmatpush3.bf16.msra.mxu0 %v510_v25  ;;  %523 = vmatprep.subr.bf16.mxu1 %v522_v24  ;;  %v269_v25 = vld [vmem:[#allocation5 + $0x20] sm:$0xff] }
  0x44   :  { %515 = vmatprep.subr.bf16.mxu0 %v514_v27  ;;  %v284_v22 = vrot.slane %v711_v32, %v283_v21 }
  0x46   :  { %525 = vmatpush3.bf16.msra.mxu1 %v522_v24 }
  0x47   :  { %517 = vmatpush3.bf16.msra.mxu0 %v514_v27  ;;  %v526_v27 = vpack.c.bf16 %v270_v26, %v269_v25 }
  0x49   :  { %527 = vmatprep.subr.bf16.mxu1 %v526_v27 }
  0x4a   :  { %529 = vmatpush3.bf16.msra.mxu1 %v526_v27 }
  0x4b   :  { %531 = vmatprep.subr.bf16.mxu1 %v530_v31 }
  0x4e   :  { %533 = vmatpush3.bf16.msra.mxu1 %v530_v31 }
  0xa7   :  { %v67_v35 = vpop.permute.xlu1 %66  ;;  %v52_v36 = vpop.permute.xlu0 %51 }
  0xa8   :  { %v77_v37 = vmul.f32 %v76_v33, %v67_v35  ;;  %v63_v38 = vmul.f32 %v62_v34, %v52_v36  ;;  %v275_v36 = vld [vmem:[#allocation5 + $0x50] sm:$0xff] }
  0xaa   :  { %v79_v43 = vadd.f32 %v77_v37, %v63_v38  ;;  %v276_v37 = vld [vmem:[#allocation5 + $0x58] sm:$0xff] }
  0xab   :  { %v71_v39 = vpop.permute.xlu1 %70  ;;  %v57_v40 = vpop.permute.xlu0 %56  ;;  %v538_v38 = vpack.c.bf16 %v276_v37, %v275_v36 }
  0xac   :  { %v78_v41 = vmul.f32 %v76_v33, %v71_v39  ;;  %v64_v42 = vmul.f32 %v62_v34, %v57_v40  ;;  %v273_v33 = vld [vmem:[#allocation5 + $0x40] sm:$0xff]  ;;  %v274_v34 = vld [vmem:[#allocation5 + $0x48] sm:$0xff] }
  0xad   :  { %v534_v35 = vpack.c.bf16 %v274_v34, %v273_v33  ;;  %v277_v39 = vld [vmem:[#allocation5 + $0x60] sm:$0xff]  ;;  %v278_v40 = vld [vmem:[#allocation5 + $0x68] sm:$0xff] }
  0xae   :  { %v80_v44 = vadd.f32 %v78_v41, %v64_v42  ;;  %v542_v41 = vpack.c.bf16 %v278_v40, %v277_v39  ;;  %v279_v42 = vld [vmem:[#allocation5 + $0x70] sm:$0xff] }
  0xaf   :  { %535 = vmatprep.subr.bf16.mxu1 %v534_v35 }
  0xb0   :  { %v81_v45 = vadd.f32 %v80_v44, %v79_v43  ;;  %537 = vmatpush3.bf16.msra.mxu1 %v534_v35 }
  0xb1   :  { %539 = vmatprep.subr.bf16.mxu1 %v538_v38 }
  0xb2   :  { %v82_v46 = vrot.slane %v81_v45, 4 }
  0xb4   :  { %v83_v47 = vadd.f32 %v82_v46, %v81_v45  ;;  %541 = vmatpush3.bf16.msra.mxu1 %v538_v38 }
  0xb5   :  { %543 = vmatprep.subr.bf16.mxu1 %v542_v41 }
  0xb6   :  { %v84_v48 = vrot.slane %v83_v47, 2 }
  0xb8   :  { %v85_v49 = vadd.f32 %v84_v48, %v83_v47  ;;  %545 = vmatpush3.bf16.msra.mxu1 %v542_v41 }
  0xba   :  { %v86_v50 = vrot.slane %v85_v49, 1 }
  0xbc   :  { %v87_v51 = vadd.f32 %v86_v50, %v85_v49 }
  0xbe   :  { %v89_v52 = vmul.f32 0.0625, %v87_v51 }
  0xc0   :  { %v90_v53 = vsub.f32 %v79_v43, %v89_v52  ;;  %v91_v54 = vsub.f32 %v80_v44, %v89_v52 }
  0xc2   :  { %v92_v55 = vmul.f32 %v90_v53, %v90_v53  ;;  %v93_v56 = vmul.f32 %v91_v54, %v91_v54 }
  0xc4   :  { %v94_v57 = vadd.f32 %v93_v56, %v92_v55 }
  0xc6   :  { %v95_v58 = vrot.slane %v94_v57, 4 }
  0xc8   :  { %v96_v59 = vadd.f32 %v95_v58, %v94_v57 }
  0xca   :  { %v97_v60 = vrot.slane %v96_v59, 2 }
  0xcc   :  { %v98_v61 = vadd.f32 %v97_v60, %v96_v59 }
  0xce   :  { %v99_v62 = vrot.slane %v98_v61, 1 }
  0xd0   :  { %v100_v63 = vadd.f32 %v99_v62, %v98_v61 }
  0xd2   :  { %v101_v0 = vmul.f32 0.0625, %v100_v63 }
  0xd4   :  { %v102_v1 = vadd.f32 1e-05, %v101_v0 }
  0xd6   :  { %560 = vrsqrt.f32 %v102_v1 }
  0xe0   :  { %v561_v2 = vpop.eup %560 }
  0xe1   :  { %v104_v4 = vmul.f32 %v561_v2, %v711_v32 }
  0xe3   :  { %v105_v5 = vmul.f32 %v104_v4, %v89_v52  ;;  %v113_v6 = vrot.slane %v104_v4, %v112_v3  ;;  %v249_v4 = vsub.s32 4, %v704_v29 }
  0xe5   :  { %v107_v7 = vrot.slane %v105_v5, 7  ;;  %v115_v10 = vmul.f32 %v113_v6, %v80_v44  ;;  %v114_v11 = vmul.f32 %v113_v6, %v79_v43  ;;  %v280_v43 = vld [vmem:[#allocation5 + $0x78] sm:$0xff] }
  0xe6   :  { %v546_v44 = vpack.c.bf16 %v280_v43, %v279_v42 }
  0xe7   :  { %v109_v9 = vsub.f32 %v711_v32, %v107_v7 }
  0xe8   :  { %547 = vmatprep.subr.bf16.mxu1 %v546_v44 }
  0xe9   :  { %v119_v12 = vrot.slane %v109_v9, %v118_v8  ;;  %549 = vmatpush3.bf16.msra.mxu1 %v546_v44 }
  0xeb   :  { %v120_v13 = vadd.f32 %v119_v12, %v114_v11  ;;  %v121_v14 = vadd.f32 %v119_v12, %v115_v10  ;;  %v255_v12 = vsub.s32 5, %v704_v29 }
  0xed   :  { %vm122_vm0 = vcmp.gt.f32.partialorder %v120_v13, 0.0  ;;  %v124_v15 = vmul.f32 0.01, %v120_v13  ;;  %vm123_vm1 = vcmp.gt.f32.partialorder %v121_v14, 0.0  ;;  %v125_v16 = vmul.f32 0.01, %v121_v14 }
  0xef   :  { %v126_v17 = vsel %vm122_vm0, %v120_v13, %v124_v15  ;;  %v127_v18 = vsel %vm123_vm1, %v121_v14, %v125_v16 }
  0xf0   :  { %448 = vmatprep.mubr.f32.mxu0 %v126_v17 }
  0xf1   :  { %449 = vmatmul.mubr.f32.vlgmr.msra.gmra.mrb[0].mxu0 %v127_v18 }
 0x1c4   :  { %v450_v45 = vpop.f32.mrb[0].mxu0 }
 0x1c5   :  { %v210_v46 = vpop.f32.mrb[1].mxu0 }
 0x1c6   :  { %v219_v47 = vadd.f32 %v450_v45, %v210_v46 }
 0x1c8   :  { %v220_v48 = vrot.slane %v219_v47, 4 }
 0x1ca   :  { %v221_v49 = vadd.f32 %v220_v48, %v219_v47 }
 0x1cc   :  { %v222_v50 = vrot.slane %v221_v49, 2 }
 0x1ce   :  { %v223_v51 = vadd.f32 %v222_v50, %v221_v49 }
 0x1d0   :  { %v224_v52 = vrot.slane %v223_v51, 1 }
 0x1d2   :  { %v225_v53 = vadd.f32 %v224_v52, %v223_v51 }
 0x1d4   :  { %v226_v54 = vmul.f32 0.0625, %v225_v53 }
 0x1d6   :  { %v227_v55 = vsub.f32 %v210_v46, %v226_v54  ;;  %v228_v56 = vsub.f32 %v450_v45, %v226_v54 }
 0x1d8   :  { %v229_v57 = vmul.f32 %v227_v55, %v227_v55  ;;  %v230_v58 = vmul.f32 %v228_v56, %v228_v56 }
 0x1da   :  { %v231_v59 = vadd.f32 %v230_v58, %v229_v57 }
 0x1dc   :  { %v232_v60 = vrot.slane %v231_v59, 4 }
 0x1de   :  { %v233_v61 = vadd.f32 %v232_v60, %v231_v59 }
 0x1e0   :  { %v234_v62 = vrot.slane %v233_v61, 2 }
 0x1e2   :  { %v235_v63 = vadd.f32 %v234_v62, %v233_v61 }
 0x1e4   :  { %v236_v0 = vrot.slane %v235_v63, 1 }
 0x1e6   :  { %v237_v1 = vadd.f32 %v236_v0, %v235_v63 }
 0x1e8   :  { %v238_v2 = vmul.f32 0.0625, %v237_v1 }
 0x1ea   :  { %v239_v3 = vadd.f32 1e-05, %v238_v2 }
 0x1ec   :  { %562 = vrsqrt.f32 %v239_v3 }
 0x1f6   :  { %v563_v5 = vpop.eup %562 }
 0x1f7   :  { %v241_v6 = vmul.f32 %v563_v5, %v711_v32 }
 0x1f9   :  { %v242_v7 = vmul.f32 %v241_v6, %v226_v54  ;;  %v250_v8 = vrot.slane %v241_v6, %v249_v4 }
 0x1fb   :  { %v244_v9 = vrot.slane %v242_v7, 7  ;;  %v251_v10 = vmul.f32 %v250_v8, %v210_v46  ;;  %v252_v11 = vmul.f32 %v450_v45, %v250_v8 }
 0x1fd   :  { %v246_v13 = vsub.f32 %v711_v32, %v244_v9 }
 0x1ff   :  { %v256_v14 = vrot.slane %v246_v13, %v255_v12 }
 0x201   :  { %v257_v15 = vadd.f32 %v256_v14, %v251_v10  ;;  %v258_v16 = vadd.f32 %v256_v14, %v252_v11 }
 0x203   :  { %vm259_vm2 = vcmp.gt.f32.partialorder %v257_v15, 0.0  ;;  %v261_v17 = vmul.f32 0.01, %v257_v15  ;;  %vm260_vm3 = vcmp.gt.f32.partialorder %v258_v16, 0.0  ;;  %v262_v18 = vmul.f32 0.01, %v258_v16 }
 0x205   :  { %v263_v19 = vsel %vm259_vm2, %v257_v15, %v261_v17  ;;  %v264_v20 = vsel %vm260_vm3, %v258_v16, %v262_v18 }
 0x206   :  { %483 = vmatprep.mubr.f32.mxu1 %v263_v19 }
 0x207   :  { %484 = vmatmul.mubr.f32.vlgmr.msra.gmra.mrb[0].mxu1 %v264_v20 }
 0x2da   :  { %v485_v23 = vpop.f32.mrb[0].mxu1 }
 0x2db   :  { %v357_v24 = vadd.f32 %v485_v23, %v284_v22  ;;  %v351_v25 = vpop.f32.mrb[1].mxu1 }
 0x2dc   :  { %v352_v26 = vadd.f32 %v351_v25, %v284_v22 }
 0x2dd   :  { %361 = vst [vmem:[#allocation7 + $0x8] sm:$0xff] %v357_v24 }
 0x2de   :  { %360 = vst [vmem:[#allocation7] sm:$0xff] %v352_v26 }
 0x2df   :  { %619 = shalt.err (!%p616_p6)
}
 0x2e0   :  { %s620_s22 = scalar_lea.hbm %s744_s4, 256 }
 0x2e1   :  { %p621_p7 = scmp.ne.s32.totalorder %s744_s4, %s620_s22  ;;  %p624_p8 = scmp.lt.u32.totalorder %s620_s22, %s744_s4 }
 0x2e3   :  { %p626_p9 = pnand %p624_p8, %p621_p7 }
 0x2e5   :  { %629 = shalt.err (!%p626_p9)
}
 0x2e6   :  { %373 = dma.vmem_to_hbm [thread:$0]  %s368_s18, 256, %s744_s4, [#allocation4], %s637_s25, %s637_s25, %s638_s26  }
 0x2e7   :  { %634 = dma.done.wait [#allocation4], 256  }
 0x2e8   :  { %635 = vsyncadd [#allocation4], 4294967040 }
 0x2e9   :  { %377 = vsyncpa [#allocation3], 1 }
 0x2ea   :  { %378 = vsyncpa [#allocation6], 1 }
 0x2eb   :  { %379 = vsyncpa [#allocation4], 1 }

</bundles_post_ra>
